<compile_context>
chip_gen: v7x
topology: tpu7x:2x2x1
jax: 0.10.0
libtpu: 0.0.40
codegen_flags: <defaults>
</compile_context>

<pallas_src>
import functools
import math

import jax
import jax.numpy as jnp
from jax.experimental import pallas as pl
from jax.experimental.pallas import tpu as pltpu

_VMEM = pl.BlockSpec(memory_space=pltpu.MemorySpace.VMEM)
_ACT_DTYPE = jnp.bfloat16            # activation storage dtype in HBM


def _pick_vmem_limit():
    # generation-aware VMEM cap: ~3/4 of physical, capped at 100 MiB.
    try:
        info = pltpu.get_tpu_info()
        cap = getattr(info, "vmem_capacity_bytes", None)
        if cap:
            return min(int(cap) * 3 // 4, 100 * 1024 * 1024)
    except Exception:
        pass
    return 48 * 1024 * 1024          # safe everywhere (v5e/v6e 128 MiB, v7x 64 MiB)


_VMEM_LIMIT = _pick_vmem_limit()


# --------------------------------------------------------------------------
# helpers
# --------------------------------------------------------------------------
def _round_up(x, m):
    return (x + m - 1) // m * m


def _tile_div(dim, candidates):
    for c in candidates:
        if dim >= c and dim % c == 0:
            return c
    return dim


def _choose_m_tile(m):
    """Pad M and pick tm so blocks are (8,128)-aligned and >=2 when possible."""
    if m >= 1024:
        mp = _round_up(m, 512)
        return mp, 512
    if m >= 32:
        mp = _round_up(m, 16)
        return mp, mp // 2           # 2 parallel M blocks, multiple of 8
    mp = _round_up(m, 8)
    return mp, mp


def _pad_vec(v, n):
    v = v.astype(jnp.float32)
    return jnp.pad(v, (0, n - v.shape[0])).reshape(1, n)


# --------------------------------------------------------------------------
# Fused matmul kernel (full-K per tile):  out = act((x @ w) * scale + bias)
# --------------------------------------------------------------------------
def _matmul_kernel(x_ref, w_ref, s_ref, b_ref, o_ref, *, act):
    y = jnp.dot(x_ref[...], w_ref[...], preferred_element_type=jnp.float32)
    y = y * s_ref[...] + b_ref[...]
    if act == "silu":
        y = y * jax.nn.sigmoid(y)
    elif act == "relu":
        y = jnp.maximum(y, 0.0)
    o_ref[...] = y.astype(o_ref.dtype)


def matmul_fused(x, w, scale=None, bias=None, act="none", out_dtype=_ACT_DTYPE):
    """y = act((x @ w) * scale + bias).  x: (M, Kx); w: (Kw, N) true-shaped.
    Output channel dim padded to a multiple of 128 (extra channels are zero)."""
    m, kx = x.shape
    kw_dim, n_true = w.shape
    kp = _round_up(max(kx, kw_dim), 128)
    np_ = _round_up(n_true, 128)

    xb = x.astype(jnp.bfloat16)
    if kx < kp:
        xb = jnp.pad(xb, ((0, 0), (0, kp - kx)))
    wb = jnp.pad(w.astype(jnp.bfloat16), ((0, kp - kw_dim), (0, np_ - n_true)))

    if scale is None:
        scale = jnp.ones((n_true,), jnp.float32)
    if bias is None:
        bias = jnp.zeros((n_true,), jnp.float32)
    sv = _pad_vec(scale, np_)
    bv = _pad_vec(bias, np_)

    mp, tm = _choose_m_tile(m)
    if mp > m:
        xb = jnp.pad(xb, ((0, mp - m), (0, 0)))
    tn = _tile_div(np_, (640, 576, 512, 448, 384, 320, 256, 192, 128))
    grid = (mp // tm, np_ // tn)

    out = pl.pallas_call(
        functools.partial(_matmul_kernel, act=act),
        out_shape=jax.ShapeDtypeStruct((mp, np_), out_dtype),
        grid_spec=pltpu.PrefetchScalarGridSpec(
            num_scalar_prefetch=0, grid=grid,
            in_specs=[pl.BlockSpec((tm, kp), lambda i, j: (i, 0)),
                      pl.BlockSpec((kp, tn), lambda i, j: (0, j)),
                      pl.BlockSpec((1, tn), lambda i, j: (0, j)),
                      pl.BlockSpec((1, tn), lambda i, j: (0, j))],
            out_specs=pl.BlockSpec((tm, tn), lambda i, j: (i, j))),
        compiler_params=pltpu.CompilerParams(
            dimension_semantics=("parallel", "parallel"),
            vmem_limit_bytes=_VMEM_LIMIT),
    )(xb, wb, sv, bv)
    if mp > m:
        out = out[:m]
    return out


# --------------------------------------------------------------------------
# Depthwise KxK conv + BN-fold + SiLU.
# Grid is (m_tiles,) only; all k*k taps live in one block and are accumulated
# by an unrolled in-kernel loop; weights are one resident (k*k,1,C) block.
# --------------------------------------------------------------------------
def _dw_kernel(x_ref, w_ref, s_ref, b_ref, o_ref, *, kk):
    acc = x_ref[0].astype(jnp.float32) * w_ref[0]
    for t in range(1, kk):                           # unrolled tap loop
        acc = acc + x_ref[t].astype(jnp.float32) * w_ref[t]
    y = acc * s_ref[...] + b_ref[...]
    o_ref[...] = (y * jax.nn.sigmoid(y)).astype(o_ref.dtype)     # SiLU


def dwconv_bn_silu(x_nhwc, w_kkc, scale, bias, k, stride):
    n, h, w_, cp = x_nhwc.shape
    c_true = w_kkc.shape[1]
    kk = k * k
    p = (k - 1) // 2
    ho = (h + 2 * p - k) // stride + 1
    wo = (w_ + 2 * p - k) // stride + 1
    xp = jnp.pad(x_nhwc, ((0, 0), (p, p), (p, p), (0, 0)))
    # TODO(synk): tap extraction (k*k HBM duplication) still happens in plain
    # JAX; an in-kernel shifted-window (halo BlockSpec + pl.ds) would remove it.
    taps = []
    for kh in range(k):
        for kw in range(k):
            taps.append(
                xp[:, kh:kh + stride * ho:stride, kw:kw + stride * wo:stride, :])
    m = n * ho * wo
    xt = jnp.stack(taps, axis=0).reshape(kk, m, cp).astype(jnp.bfloat16)
    wv = jnp.pad(w_kkc.astype(jnp.float32),
                 ((0, 0), (0, cp - c_true))).reshape(kk, 1, cp)
    sv = _pad_vec(scale, cp)
    bv = _pad_vec(bias, cp)

    # VMEM-budget-aware tile: kk*tm*cp bf16, double buffered, stays modest on v7x.
    budget = min(_VMEM_LIMIT // 3, 16 * 1024 * 1024)
    cap = max(8, budget // (kk * cp * 2 * 2))
    tm = 8
    for c in (256, 128, 64, 32, 16, 8):
        if c <= cap:
            tm = c
            break
    tm = min(tm, _round_up(m, 8))
    mp = _round_up(m, tm)
    if mp // tm < 2 and mp >= 16 and (mp // 2) % 8 == 0:
        tm = mp // 2                                  # >=2 parallel blocks (v7x)
    if mp > m:
        xt = jnp.pad(xt, ((0, 0), (0, mp - m), (0, 0)))

    out = pl.pallas_call(
        functools.partial(_dw_kernel, kk=kk),
        out_shape=jax.ShapeDtypeStruct((mp, cp), _ACT_DTYPE),
        grid_spec=pltpu.PrefetchScalarGridSpec(
            num_scalar_prefetch=0, grid=(mp // tm,),
            in_specs=[pl.BlockSpec((kk, tm, cp), lambda i: (0, i, 0)),
                      pl.BlockSpec((kk, 1, cp), lambda i: (0, 0, 0)),
                      pl.BlockSpec((1, cp), lambda i: (0, 0)),
                      pl.BlockSpec((1, cp), lambda i: (0, 0))],
            out_specs=pl.BlockSpec((tm, cp), lambda i: (i, 0))),
        compiler_params=pltpu.CompilerParams(
            dimension_semantics=("parallel",),
            vmem_limit_bytes=_VMEM_LIMIT),
    )(xt, wv, sv, bv)
    if mp > m:
        out = out[:m]
    return out.reshape(n, ho, wo, cp)


# --------------------------------------------------------------------------
# Fused squeeze-excitation + projection 1x1 conv + BN + residual (one kernel
# per image).  The gated expanded activation never touches HBM.
# --------------------------------------------------------------------------
def _se_proj_kernel(*refs, has_res):
    if has_res:
        (x_ref, w1_ref, b1_ref, w2_ref, b2_ref,
         wp_ref, s_ref, b_ref, r_ref, o_ref) = refs
    else:
        (x_ref, w1_ref, b1_ref, w2_ref, b2_ref,
         wp_ref, s_ref, b_ref, o_ref) = refs
        r_ref = None
    x = x_ref[0]                                              # (HW, Cp) bf16
    xf = x.astype(jnp.float32)
    pooled = jnp.mean(xf, axis=0, keepdims=True)              # (1, Cp)
    h = jnp.dot(pooled, w1_ref[...], preferred_element_type=jnp.float32)
    h = h + b1_ref[...]
    h = h * jax.nn.sigmoid(h)                                 # SiLU
    g = jnp.dot(h, w2_ref[...], preferred_element_type=jnp.float32)
    g = jax.nn.sigmoid(g + b2_ref[...])                       # (1, Cp) gate
    xg = (xf * g).astype(jnp.bfloat16)                        # gated, in VMEM
    y = jnp.dot(xg, wp_ref[...], preferred_element_type=jnp.float32)
    y = y * s_ref[...] + b_ref[...]                           # folded BN
    if r_ref is not None:                                     # residual (eval:
        y = y + r_ref[0].astype(jnp.float32)                  # stoch-depth = id)
    o_ref[0] = y.astype(o_ref.dtype)


def se_proj_block(x_nhwc, w1, b1, w2, b2, w_proj, p_scale, p_bias,
                  residual=None):
    n, h, w_, cp = x_nhwc.shape
    c_true, sq = w1.shape
    cout = w_proj.shape[1]
    coutp = _round_up(cout, 128)
    sqp = 128
    hw = h * w_

    w1p = jnp.pad(w1.astype(jnp.float32), ((0, cp - c_true), (0, sqp - sq)))
    b1p = _pad_vec(b1, sqp)
    w2p = jnp.pad(w2.astype(jnp.float32), ((0, sqp - sq), (0, cp - c_true)))
    b2p = _pad_vec(b2, cp)
    wpp = jnp.pad(w_proj.astype(jnp.bfloat16),
                  ((0, cp - c_true), (0, coutp - cout)))
    sv = _pad_vec(p_scale, coutp)
    bv = _pad_vec(p_bias, coutp)

    inputs = [x_nhwc.reshape(n, hw, cp), w1p, b1p, w2p, b2p, wpp, sv, bv]
    in_specs = [pl.BlockSpec((1, hw, cp), lambda i: (i, 0, 0)),
                pl.BlockSpec((cp, sqp), lambda i: (0, 0)),
                pl.BlockSpec((1, sqp), lambda i: (0, 0)),
                pl.BlockSpec((sqp, cp), lambda i: (0, 0)),
                pl.BlockSpec((1, cp), lambda i: (0, 0)),
                pl.BlockSpec((cp, coutp), lambda i: (0, 0)),
                pl.BlockSpec((1, coutp), lambda i: (0, 0)),
                pl.BlockSpec((1, coutp), lambda i: (0, 0))]
    has_res = residual is not None
    if has_res:
        inputs.append(residual.reshape(n, hw, coutp).astype(jnp.bfloat16))
        in_specs.append(pl.BlockSpec((1, hw, coutp), lambda i: (i, 0, 0)))

    out = pl.pallas_call(
        functools.partial(_se_proj_kernel, has_res=has_res),
        out_shape=jax.ShapeDtypeStruct((n, hw, coutp), _ACT_DTYPE),
        grid_spec=pltpu.PrefetchScalarGridSpec(
            num_scalar_prefetch=0, grid=(n,),
            in_specs=in_specs,
            out_specs=pl.BlockSpec((1, hw, coutp), lambda i: (i, 0, 0))),
        compiler_params=pltpu.CompilerParams(
            dimension_semantics=("parallel",),
            vmem_limit_bytes=_VMEM_LIMIT),
    )(*inputs)
    return out.reshape(n, h, w_, coutp)


# --------------------------------------------------------------------------
# Fused tail: avg-pool + classifier + question FCs + combine FCs (one kernel).
# torch.cat is realised by splitting the combine_fc1 weight (img rows first).
# --------------------------------------------------------------------------
def _tail_kernel(xh_ref, q_ref, w1_ref, b1_ref, w2_ref, b2_ref,
                 wq1_ref, bq1_ref, wq2_ref, bq2_ref,
                 wc1a_ref, wc1b_ref, bc1_ref, wc2_ref, bc2_ref, o_ref):
    pooled = jnp.mean(xh_ref[...].astype(jnp.float32), axis=1)        # (N,1280)
    # TODO(synk): Dropout(p=0.2) is identity in eval mode; not implemented.
    h = jnp.dot(pooled.astype(jnp.bfloat16), w1_ref[...],
                preferred_element_type=jnp.float32) + b1_ref[...]
    h = jnp.maximum(h, 0.0)                                            # ReLU
    img_f = jnp.dot(h.astype(jnp.bfloat16), w2_ref[...],
                    preferred_element_type=jnp.float32) + b2_ref[...]  # (N,32)
    q = q_ref[...].astype(jnp.float32)
    q = jnp.tanh(jnp.dot(q, wq1_ref[...],
                         preferred_element_type=jnp.float32) + bq1_ref[...])
    q = jnp.tanh(jnp.dot(q, wq2_ref[...],
                         preferred_element_type=jnp.float32) + bq2_ref[...])
    o = jnp.tanh(jnp.dot(img_f, wc1a_ref[...], preferred_element_type=jnp.float32)
                 + jnp.dot(q, wc1b_ref[...], preferred_element_type=jnp.float32)
                 + bc1_ref[...])
    o_ref[...] = (jnp.dot(o, wc2_ref[...], preferred_element_type=jnp.float32)
                  + bc2_ref[...])


def tail_head(x_nhwc, question, P):
    n, h, w_, cp = x_nhwc.shape                     # cp == 1280
    hw = h * w_
    num_classes = P["c2_b"].shape[0]
    wc1 = P["c1_w"].astype(jnp.float32)             # (64, 32): [img ; question]
    return pl.pallas_call(
        _tail_kernel,
        out_shape=jax.ShapeDtypeStruct((n, num_classes), jnp.float32),
        in_specs=[_VMEM] * 15,
        out_specs=_VMEM,
        compiler_params=pltpu.CompilerParams(vmem_limit_bytes=_VMEM_LIMIT),
    )(x_nhwc.reshape(n, hw, cp),
      question.astype(jnp.float32),
      P["cls1_w"].astype(jnp.bfloat16), P["cls1_b"].reshape(1, -1),
      P["cls2_w"].astype(jnp.bfloat16), P["cls2_b"].reshape(1, -1),
      P["q1_w"].astype(jnp.float32), P["q1_b"].reshape(1, -1),
      P["q2_w"].astype(jnp.float32), P["q2_b"].reshape(1, -1),
      wc1[:32], wc1[32:], P["c1_b"].reshape(1, -1),
      P["c2_w"].astype(jnp.float32), P["c2_b"].reshape(1, -1))


# --------------------------------------------------------------------------
# Conv wrappers (shape glue around the fused matmul kernel)
# --------------------------------------------------------------------------
def conv1x1_bn_act(x_nhwc, w, scale, bias, act):
    n, h, w_, cp = x_nhwc.shape
    y = matmul_fused(x_nhwc.reshape(n * h * w_, cp), w, scale, bias, act)
    return y.reshape(n, h, w_, y.shape[-1])


def conv_stem(x_nhwc, w_flat, k, stride, scale, bias):
    # TODO(synk): im2col done in plain JAX (9x expansion); could be moved
    # in-kernel (per-tap BlockSpec) for production resolutions.
    n, h, w_, cin = x_nhwc.shape
    p = (k - 1) // 2
    ho = (h + 2 * p - k) // stride + 1
    wo = (w_ + 2 * p - k) // stride + 1
    xp = jnp.pad(x_nhwc, ((0, 0), (p, p), (p, p), (0, 0)))
    patches = []
    for kh in range(k):
        for kw in range(k):
            patches.append(
                xp[:, kh:kh + stride * ho:stride, kw:kw + stride * wo:stride, :])
    xt = jnp.stack(patches, axis=3).reshape(n * ho * wo, k * k * cin)
    y = matmul_fused(xt, w_flat, scale, bias, "silu")
    return y.reshape(n, ho, wo, y.shape[-1])


# --------------------------------------------------------------------------
# Deterministic synthetic parameters (same shapes as torchvision
# efficientnet_b0 + the TFIDF head; no checkpoint loading).
# --------------------------------------------------------------------------
MBCONF = [
    (1, 3, 1, 32, 16, 1),
    (6, 3, 2, 16, 24, 2),
    (6, 5, 2, 24, 40, 2),
    (6, 3, 2, 40, 80, 3),
    (6, 5, 1, 80, 112, 3),
    (6, 5, 2, 112, 192, 4),
    (6, 3, 1, 192, 320, 1),
]
BN_EPS = 1e-3


class ParamGen:
    def __init__(self, seed):
        self.key = jax.random.PRNGKey(seed)

    def normal(self, shape, scale):
        self.key, sub = jax.random.split(self.key)
        return jax.random.normal(sub, shape, dtype=jnp.float32) * scale


def bn_fold(pg, c):
    gamma = 1.0 + pg.normal((c,), 0.01)
    beta = pg.normal((c,), 0.01)
    mean = pg.normal((c,), 0.01)
    var = 1.0 + jnp.abs(pg.normal((c,), 0.01))
    scale = gamma / jnp.sqrt(var + BN_EPS)
    bias = beta - mean * scale
    return scale, bias


def linear_params(pg, out_f, in_f):
    w = pg.normal((out_f, in_f), 1.0 / math.sqrt(in_f))   # PyTorch (out,in)
    b = pg.normal((out_f,), 0.01)
    return w.T, b                                          # stored as (in,out)


def build_params(seed, embedding_size, num_classes):
    pg = ParamGen(seed)
    P = {}
    # stem: Conv2d(3,32,3,s=2,p=1,bias=False) + BN + SiLU
    w = pg.normal((32, 3, 3, 3), 1.0 / math.sqrt(3 * 9))           # OIHW
    P["stem_w"] = jnp.transpose(w, (2, 3, 1, 0)).reshape(27, 32)   # (kk*cin,cout)
    P["stem_scale"], P["stem_bias"] = bn_fold(pg, 32)

    blocks = []
    for (e, k, s, cin_stage, cout, n_layers) in MBCONF:
        for i in range(n_layers):
            b_in = cin_stage if i == 0 else cout
            b_s = s if i == 0 else 1
            exp = b_in * e
            sq = max(1, b_in // 4)
            blk = {"k": k, "s": b_s, "use_res": (b_s == 1 and b_in == cout)}
            if e != 1:
                we = pg.normal((exp, b_in, 1, 1), 1.0 / math.sqrt(b_in))
                blk["w_exp"] = we.reshape(exp, b_in).T
                blk["s_exp"], blk["b_exp"] = bn_fold(pg, exp)
            wd = pg.normal((exp, 1, k, k), 1.0 / math.sqrt(k * k))
            blk["w_dw"] = wd.reshape(exp, k * k).T                 # (kk, exp)
            blk["s_dw"], blk["b_dw"] = bn_fold(pg, exp)
            w1 = pg.normal((sq, exp, 1, 1), 1.0 / math.sqrt(exp))
            blk["w_se1"] = w1.reshape(sq, exp).T
            blk["b_se1"] = pg.normal((sq,), 0.01)
            w2 = pg.normal((exp, sq, 1, 1), 1.0 / math.sqrt(sq))
            blk["w_se2"] = w2.reshape(exp, sq).T
            blk["b_se2"] = pg.normal((exp,), 0.01)
            wp = pg.normal((cout, exp, 1, 1), 1.0 / math.sqrt(exp))
            blk["w_proj"] = wp.reshape(cout, exp).T
            blk["s_proj"], blk["b_proj"] = bn_fold(pg, cout)
            blocks.append(blk)
    P["blocks"] = blocks

    # head: Conv2d(320,1280,1,bias=False) + BN + SiLU
    wh = pg.normal((1280, 320, 1, 1), 1.0 / math.sqrt(320))
    P["head_w"] = wh.reshape(1280, 320).T
    P["head_scale"], P["head_bias"] = bn_fold(pg, 1280)

    # classifier / question / combine heads
    P["cls1_w"], P["cls1_b"] = linear_params(pg, 512, 1280)
    P["cls2_w"], P["cls2_b"] = linear_params(pg, 32, 512)
    P["q1_w"], P["q1_b"] = linear_params(pg, 64, embedding_size)
    P["q2_w"], P["q2_b"] = linear_params(pg, 32, 64)
    P["c1_w"], P["c1_b"] = linear_params(pg, 32, 64)
    P["c2_w"], P["c2_b"] = linear_params(pg, num_classes, 32)
    return P


# --------------------------------------------------------------------------
# Forward pass
# --------------------------------------------------------------------------
def mbconv(x, blk):
    inp = x
    if "w_exp" in blk:
        x = conv1x1_bn_act(x, blk["w_exp"], blk["s_exp"], blk["b_exp"], "silu")
    x = dwconv_bn_silu(x, blk["w_dw"], blk["s_dw"], blk["b_dw"],
                       blk["k"], blk["s"])
    # SE gate + projection 1x1 + folded BN + residual, fused in one kernel
    x = se_proj_block(x, blk["w_se1"], blk["b_se1"], blk["w_se2"], blk["b_se2"],
                      blk["w_proj"], blk["s_proj"], blk["b_proj"],
                      residual=inp if blk["use_res"] else None)
    return x


def efficientnet_tfidf_forward(params, img_nchw, question):
    # NCHW -> NHWC (channels on the 128-lane axis)
    x = jnp.transpose(img_nchw, (0, 2, 3, 1)).astype(jnp.float32)

    # features
    x = conv_stem(x, params["stem_w"], 3, 2,
                  params["stem_scale"], params["stem_bias"])
    for blk in params["blocks"]:
        x = mbconv(x, blk)
    x = conv1x1_bn_act(x, params["head_w"],
                       params["head_scale"], params["head_bias"], "silu")

    # fused tail: avg-pool + classifier + question branch + combine
    return tail_head(x, question, params)


# --------------------------------------------------------------------------
if __name__ == "__main__":
    EMBEDDING_SIZE = 20
    NUM_CLASSES = 5

    key = jax.random.PRNGKey(0)
    k_img, k_q = jax.random.split(key)
    img = jax.random.normal(k_img, (2, 3, 32, 32), jnp.float32)       # NCHW
    question = jax.random.normal(k_q, (2, EMBEDDING_SIZE), jnp.float32)

    params = build_params(seed=0, embedding_size=EMBEDDING_SIZE,
                          num_classes=NUM_CLASSES)

    out = efficientnet_tfidf_forward(params, img, question)
    out = jax.block_until_ready(out)
    assert out.shape == (2, NUM_CLASSES), out.shape
    assert jnp.all(jnp.isfinite(out))
    print("KERNEL_OK")
</pallas_src>

<mosaic_0001>
module attributes {stable_mosaic.version = 11 : i64} {
  func.func @_matmul_kernel(%arg0: i32, %arg1: i32, %arg2: memref<256x128xbf16, #tpu.memory_space<vmem>>, %arg3: memref<128x128xbf16, #tpu.memory_space<vmem>>, %arg4: memref<1x128xf32, #tpu.memory_space<vmem>>, %arg5: memref<1x128xf32, #tpu.memory_space<vmem>>, %arg6: memref<256x128xbf16, #tpu.memory_space<vmem>>) attributes {dimension_semantics = [#tpu.dimension_semantics<parallel>, #tpu.dimension_semantics<parallel>], iteration_bounds = array<i64: 2, 1>, scalar_prefetch = 0 : i64, scratch_operands = 0 : i64, tpu.core_type = #tpu.core_type<tc>, window_params = [{transform_indices = @transform_0, window_bounds = array<i64: 256, 128>}, {transform_indices = @transform_1, window_bounds = array<i64: 128, 128>}, {transform_indices = @transform_2, window_bounds = array<i64: 1, 128>}, {transform_indices = @transform_3, window_bounds = array<i64: 1, 128>}, {transform_indices = @transform_4, window_bounds = array<i64: 256, 128>}]} {
    %c0 = arith.constant 0 : index
    %c0_0 = arith.constant 0 : index
    %0 = vector.load %arg2[%c0, %c0_0] : memref<256x128xbf16, #tpu.memory_space<vmem>>, vector<256x128xbf16>
    %c0_1 = arith.constant 0 : index
    %c0_2 = arith.constant 0 : index
    %1 = vector.load %arg3[%c0_1, %c0_2] : memref<128x128xbf16, #tpu.memory_space<vmem>>, vector<128x128xbf16>
    %cst = arith.constant dense<0.000000e+00> : vector<256x128xf32>
    %2 = tpu.matmul %0, %1, %cst {dimension_numbers = #tpu.dot_dimension_numbers<[1], [0], [0], [1], [0, 0, 1, 1], [], []>} : vector<256x128xbf16>, vector<128x128xbf16>, vector<256x128xf32> -> vector<256x128xf32>
    %c0_3 = arith.constant 0 : index
    %c0_4 = arith.constant 0 : index
    %3 = vector.load %arg4[%c0_3, %c0_4] : memref<1x128xf32, #tpu.memory_space<vmem>>, vector<1x128xf32>
    %4 = vector.broadcast %3 : vector<1x128xf32> to vector<256x128xf32>
    %5 = arith.mulf %2, %4 : vector<256x128xf32>
    %c0_5 = arith.constant 0 : index
    %c0_6 = arith.constant 0 : index
    %6 = vector.load %arg5[%c0_5, %c0_6] : memref<1x128xf32, #tpu.memory_space<vmem>>, vector<1x128xf32>
    %7 = vector.broadcast %6 : vector<1x128xf32> to vector<256x128xf32>
    %8 = arith.addf %5, %7 : vector<256x128xf32>
    %9 = arith.negf %8 : vector<256x128xf32>
    %10 = math.exp %9 : vector<256x128xf32>
    %cst_7 = arith.constant 1.000000e+00 : f32
    %11 = vector.broadcast %cst_7 : f32 to vector<256x128xf32>
    %12 = arith.addf %11, %10 : vector<256x128xf32>
    %13 = arith.divf %11, %12 : vector<256x128xf32>
    %14 = arith.mulf %8, %13 : vector<256x128xf32>
    %15 = arith.truncf %14 : vector<256x128xf32> to vector<256x128xbf16>
    %c0_8 = arith.constant 0 : index
    %c0_9 = arith.constant 0 : index
    %16 = vector.load %arg6[%c0_8, %c0_9] : memref<256x128xbf16, #tpu.memory_space<vmem>>, vector<256x128xbf16>
    tpu.vector_store %arg6[%c0_8, %c0_9], %15 {strides = array<i32>} : memref<256x128xbf16, #tpu.memory_space<vmem>>, vector<256x128xbf16>,
    return
  }
  func.func @transform_0(%arg0: i32, %arg1: i32) -> (i32, i32) {
    %c0_i32 = arith.constant 0 : i32
    %c0_i32_0 = arith.constant 0 : i32
    return %arg0, %c0_i32 : i32, i32
  }
  func.func @transform_1(%arg0: i32, %arg1: i32) -> (i32, i32) {
    %c0_i32 = arith.constant 0 : i32
    %c0_i32_0 = arith.constant 0 : i32
    return %c0_i32, %arg1 : i32, i32
  }
  func.func @transform_2(%arg0: i32, %arg1: i32) -> (i32, i32) {
    %c0_i32 = arith.constant 0 : i32
    %c0_i32_0 = arith.constant 0 : i32
    return %c0_i32, %arg1 : i32, i32
  }
  func.func @transform_3(%arg0: i32, %arg1: i32) -> (i32, i32) {
    %c0_i32 = arith.constant 0 : i32
    %c0_i32_0 = arith.constant 0 : i32
    return %c0_i32, %arg1 : i32, i32
  }
  func.func @transform_4(%arg0: i32, %arg1: i32) -> (i32, i32) {
    %c0_i32 = arith.constant 0 : i32
    return %arg0, %arg1 : i32, i32
  }
}

</mosaic_0001>

<bundles_post_ra>
// kernel: tpu_custom_call.1
= control target key start
LH: loop header
LB: loop body
LE: loop exit
PB: predicated region body
PF: predicated region fallthrough
CT: control target
= control target key end

     0   :  { %9 = vsyncpa [#allocation3], 0  ;;  %s2463_s0 = inlined_call_operand.hbm [shape: bf16[512,128], index: 0, kind: input, shape index: {}]   ;;  %s2464_s1 = inlined_call_operand.hbm [shape: bf16[128,128], index: 1, kind: input, shape index: {}]   ;;  %s2465_s2 = inlined_call_operand.vmem [shape: f32[1,128], index: 2, kind: input, shape index: {}]   ;;  %s2466_s3 = inlined_call_operand.vmem [shape: f32[1,128], index: 3, kind: input, shape index: {}]   ;;  %s2467_s4 = inlined_call_operand.hbm [shape: bf16[512,128], index: 4, kind: output, shape index: {}]  }
   0x1   :  { %11 = vsyncpa [#allocation3 + $0x1], 0 }
   0x2   :  { %12 = vsyncpa [#allocation6], 0 }
   0x3   :  { %13 = vsyncpa [#allocation4], 0 }
   0x4   :  { %15 = vsyncpa [#allocation4 + $0x1], 0  ;;  %s1965_s15 = smov 0   ;;  %s1967_s16 = smov 0  }
   0x5   :  { %s1969_s17 = smov 0   ;;  %s1971_s18 = smov 0  }
   0x6   :  { %s1973_s19 = smov 0   ;;  %s1975_s20 = smov 0  }
   0x7 LB: > { %s1232_s21 = sadd.s32 4294967295, %s1931_s20   ;;  %s1233_s22 = sadd.s32 4294967294, %s1931_s20   ;;  %s1931_s20 = sphi %s1975_s20, %s21_s20   ;;  %s1927_s19 = sphi %s1973_s19, %s2491_s19   ;;  %s1923_s18 = sphi %s1971_s18, %s2490_s18   ;;  %s1919_s17 = sphi %s1969_s17, %s2489_s17   ;;  %s1915_s16 = sphi %s1967_s16, %s2488_s16   ;;  %s1911_s15 = sphi %s1965_s15, %s2487_s15  }
   0x8   : > { %p53_p0 = scmp.ne.s32.totalorder %s1915_s16, %s1911_s15  ;;  %p1999_p1 = scmp.eq.s32.totalorder %s1232_s21, 0 }
   0x9   : > { %p2003_p2 = scmp.eq.s32.totalorder %s1232_s21, 1  ;;  %p163_p3 = scmp.eq.s32.totalorder %s1233_s22, 1 }
   0xa   : > { %s2472_s23 = scalar_select %p1999_p1, 1, 0 }
   0xb   : > { %s2473_s24 = scalar_select %p2003_p2, 1, 0 }
   0xc   : > { %p2009_p4 = por %p1999_p1, %p53_p0  ;;  %p1234_p5 = scmp.ge.s32.totalorder %s1931_s20, 1 }
   0xd   : > { %p2014_p6 = por %p163_p3, %p53_p0  ;;  %p170_p7 = scmp.lt.s32.totalorder %s1931_s20, 3 }
   0xe   : > { %s2474_s25 = scalar_select %p2009_p4, 1, 0 }
   0xf   : > { %s2475_s26 = scalar_select %p2014_p6, 1, 0 }
  0x10   : > { %p2019_p8 = pnand %p1234_p5, %p170_p7  ;;  %s1933_s28 = smov [#allocation5]  }
  0x11   : > { %s184_s29 = sshll.u32 %s1933_s28, 4  ;;  %s33_s5 = sadd.s32 1, %s1927_s19  ;;  %s185_s29 = int_to_ptr.vmem [resolvable:$true] %s184_s29 }
  0x12   : > { %s2476_s27 = scalar_select %p2019_p8, 1, 0 }
  0x13   : > { %p1566_p9 = pneg %p2019_p8  ;;  %s1787_s8 = scalar_lea.hbm %s2464_s1, 1024 }
  0x14   : > { %p1788_p12 = scmp.ne.s32.totalorder %s2464_s1, %s1787_s8  ;;  %p1794_p5 = scmp.lt.u32.totalorder %s1787_s8, %s2464_s1 }
  0x15   : > { %p2028_p11 = pnand %p1566_p9, %p1999_p1 }
  0x17   : > { %p1789_p13 = pneg %p2028_p11 }
  0x19   : > { %p1790_p0 = pnand %p1789_p13, %p1788_p12 }
  0x1b   : > { %p1791_p3 = pneg %p1790_p0 }
  0x1d   : > { %p1796_p7 = pnand %p1794_p5, %p1791_p3 }
  0x1f   : > { %1799 = shalt.err (!%p1796_p7)
}
  0x20   : > { %s1800_s13 = scalar_lea.vmem %s185_s29, 1024  ;;  %p1808_p1 = scmp.lt.s32.totalorder %s185_s29, %s185_s29 }
  0x21   : > { %p1801_p9 = scmp.ne.s32.totalorder %s185_s29, %s1800_s13  ;;  %p1809_p4 = scmp.lt.s32.totalorder %s1800_s13, %s1800_s13 }
  0x23   : > { %p1803_p10 = pnand %p1801_p9, %p1789_p13  ;;  %p1810_p8 = por %p1809_p4, %p1808_p1 }
  0x25   : > { %p1804_p6 = pneg %p1803_p10 }
  0x27   : > { %p1811_p2 = pnand %p1810_p8, %p1804_p6 }
  0x29   : > { %1814 = shalt.err (!%p1811_p2)
}
  0x2a   : > { %s1934_s14 = smov 64   ;;  %s1935_s21 = smov 4  }
  0x2b   : > { %1569 = dma.hbm_to_vmem [thread:$0]  (!%p2028_p11), %s2464_s1, 1024, %s185_s29, [#allocation6], %s1934_s14, %s1934_s14, %s1935_s21  }
  0x2c   : > { %p35_p1 = scmp.ge.s32.totalorder %s33_s5, 2  ;;  %s40_s6 = sadd.s32 1, %s1919_s17 }
  0x2d   : > { %p47_p2 = scmp.ne.s32.totalorder %s1919_s17, %s1915_s16  ;;  %p48_p4 = scmp.eq.s32.totalorder %s1931_s20, 0 }
  0x2e   : > { %s2493_s5 = smov (%p35_p1, %s33_s5), 0  ;;  %p2479_p8 = scmp.ne.s32.totalorder %s2473_s24, 0 }
  0x2f   : > { %p2058_p6 = por %p48_p4, %p47_p2  ;;  %s37_s8 = ssub.s32 %s1927_s19, %s2493_s5 }
  0x30   : > { %p2064_p10 = por %p2479_p8, %p47_p2  ;;  %p1579_p12 = scmp.lt.s32.totalorder %s1931_s20, 2 }
  0x31   : > { %p38_p11 = scmp.eq.s32.totalorder %s37_s8, 0  ;;  %s210_s29 = sand.u32 1, %s1919_s17  }
  0x32   : > { %s1239_s9 = sshll.u32 %s210_s29, 7  ;;  %s1341_s11 = sshll.u32 %s1927_s19, 11 }
  0x33   : > { %s2073_s10 = scalar_select %p38_p11, %s1919_s17, %s40_s6  }
  0x34   : > { %s2079_s22 = scalar_lea.hbm %s2463_s0, %s1341_s11  ;;  %s214_s24 = scalar_lea.vmem [#allocation2], %s1239_s9 }
  0x35   : > { %s221_s28 = sshll.u32 %s214_s24, 4  ;;  %p2085_p13 = pnand %p1579_p12, %p2058_p6  ;;  %s2081_s28 = int_to_ptr.vmem [resolvable:$true] %s221_s28 }
  0x36   : > { %s2089_s6 = scalar_lea.sflag [#allocation3], %s210_s29  ;;  %s1815_s12 = scalar_lea.hbm %s2079_s22, 2048 }
  0x37   : > { %p1816_p0 = scmp.ne.s32.totalorder %s2079_s22, %s1815_s12  ;;  %p1817_p3 = pneg %p2085_p13 }
  0x38   : > { %s1820_s7 = scalar_lea.hbm %s2463_s0, 4096  ;;  %p1821_p9 = scmp.lt.u32.totalorder %s2079_s22, %s2463_s0 }
  0x39   : > { %p1818_p5 = pnand %p1817_p3, %p1816_p0  ;;  %p1822_p1 = scmp.lt.u32.totalorder %s1820_s7, %s1815_s12 }
  0x3a   : > { %p1824_p4 = scmp.lt.u32.totalorder %s1815_s12, %s2079_s22 }
  0x3b   : > { %p1819_p7 = pneg %p1818_p5  ;;  %p1823_p2 = por %p1822_p1, %p1821_p9 }
  0x3d   : > { %p1825_p6 = por %p1824_p4, %p1823_p2 }
  0x3f   : > { %p1826_p8 = pnand %p1825_p6, %p1819_p7 }
  0x41   : > { %1829 = shalt.err (!%p1826_p8)
}
  0x42   : > { %s1830_s29 = scalar_lea.vmem %s2081_s28, 2048  ;;  %s1936_s9 = smov [#allocation2]  }
  0x43   : > { %p1831_p12 = scmp.ne.s32.totalorder %s2081_s28, %s1830_s29  ;;  %s1835_s11 = sshll.u32 %s1936_s9, 4  ;;  %s1836_s11 = int_to_ptr.vmem [resolvable:$false] %s1835_s11 }
  0x44   : > { %s1837_s13 = scalar_lea.vmem %s1836_s11, 4096  ;;  %p1838_p5 = scmp.lt.s32.totalorder %s2081_s28, %s1836_s11 }
  0x45   : > { %p1833_p11 = pnand %p1831_p12, %p1817_p3  ;;  %p1839_p9 = scmp.lt.s32.totalorder %s1837_s13, %s1830_s29 }
  0x47   : > { %p1834_p0 = pneg %p1833_p11  ;;  %p1840_p1 = por %p1839_p9, %p1838_p5 }
  0x49   : > { %p1841_p2 = pnand %p1840_p1, %p1834_p0 }
  0x4b   : > { %1844 = shalt.err (!%p1841_p2)
}
  0x4c   : > { %1573 = dma.hbm_to_vmem [thread:$0]  (!%p2085_p13), %s2079_s22, 2048, %s2081_s28, %s2089_s6, %s1934_s14, %s1934_s14, %s1935_s21  }
  0x4d   : > { %p2482_p3 = scmp.ne.s32.totalorder %s2476_s27, 0 }
  0x4e   : > { %s2123_s12 = sand.u32 (!%p2482_p3), 1, %s1915_s16   ;;  %p2483_p7 = scmp.ne.s32.totalorder (!%p2482_p3), %s2474_s25, 0 }
  0x4f   : > { %233 = sbr.rel (%p2482_p3) target bundleno = 441 (0x1b9), region = 36  ;;  %s1243_s7 = sshll.u32 (!%p2482_p3), %s2123_s12, 7 }
  0x50   : > { %s236_s24 = scalar_lea.sflag (!%p2482_p3), [#allocation3], %s2123_s12  ;;  %s2129_s8 = scalar_lea.vmem (!%p2482_p3), [#allocation2], %s1243_s7 }
  0x56   : > { %1898 = dma.done.wait (%p2483_p7), %s236_s24, 2048  }
  0x57   : > { %1900 = vsyncadd (%p2483_p7), %s236_s24, 4294965248  ;;  %p2484_p13 = scmp.ne.s32.totalorder %s2472_s23, 0 }
  0x59   : > { %1902 = dma.done.wait (%p2484_p13), [#allocation6], 1024  }
  0x5a   : > { %1904 = vsyncadd (%p2484_p13), [#allocation6], 4294966272  ;;  %v1635_v0 = vld [vmem:[#allocation5] sm:$0xff]   ;;  %v1636_v1 = vld [vmem:[#allocation5 + $0x8] sm:$0xff]   ;;  %s2319_s21 = scalar_lea.vmem [#allocation7], %s1243_s7  ;;  %s1374_s22 = sshll.u32 %s1923_s18, 11 }
  0x5b   : > { %1494 = vmatprep.subr.bf16.mxu0 %v1635_v0  ;;  %1542 = vmatprep.subr.bf16.mxu1 %v1635_v0  ;;  %v1637_v2 = vld [vmem:[#allocation5 + $0x10] sm:$0xff]   ;;  %v1638_v3 = vld [vmem:[#allocation5 + $0x18] sm:$0xff]   ;;  %v1643_v4 = vld [vmem:[%s2129_s8] sm:$0xff]   ;;  %s1113_s28 = sshll.u32 %s2319_s21, 4  ;;  %s2409_s18 = scalar_lea.hbm %s2467_s4, %s1374_s22  ;;  %s2411_s28 = int_to_ptr.vmem [resolvable:$true] %s1113_s28 }
  0x5c   : > { %1495 = vmatpush3.bf16.msra.mxu0 %v1635_v0  ;;  %1550 = vmatpush3.bf16.msra.mxu1 %v1635_v0  ;;  %v1644_v5 = vld [vmem:[%s2129_s8 + $0x40] sm:$0xff]   ;;  %v1640_v7 = vld [vmem:[#allocation5 + $0x28] sm:$0xff]   ;;  %v1641_v8 = vld [vmem:[#allocation5 + $0x30] sm:$0xff]   ;;  %s1099_s9 = scalar_lea.sflag [#allocation4], %s2123_s12  ;;  %s1845_s11 = scalar_lea.vmem %s2411_s28, 2048 }
  0x5d   : > { %1496 = vmatprep.subr.bf16.mxu0 %v1636_v1  ;;  %1543 = vmatprep.subr.bf16.mxu1 %v1636_v1  ;;  %v1639_v6 = vld [vmem:[#allocation5 + $0x20] sm:$0xff]   ;;  %v1642_v9 = vld [vmem:[#allocation5 + $0x38] sm:$0xff]   ;;  %v1645_v10 = vld [vmem:[%s2129_s8 + $0x8] sm:$0xff]   ;;  %p1846_p4 = scmp.ne.s32.totalorder %s2411_s28, %s1845_s11  ;;  %s1937_s13 = smov [#allocation7]  }
  0x5e   : > { %1510 = vmatprep.mubr.bf16.mxu0 %v1643_v4  ;;  %1526 = vmatprep.mubr.bf16.mxu1 %v1644_v5  ;;  %v1646_v11 = vld [vmem:[%s2129_s8 + $0x48] sm:$0xff]   ;;  %v1647_v12 = vld [vmem:[%s2129_s8 + $0x10] sm:$0xff]   ;;  %v1649_v14 = vld [vmem:[%s2129_s8 + $0x18] sm:$0xff]   ;;  %s1849_s7 = sshll.u32 %s1937_s13, 4  ;;  %s1850_s7 = int_to_ptr.vmem [resolvable:$false] %s1849_s7 }
  0x5f   : > { %v1648_v13 = vld [vmem:[%s2129_s8 + $0x50] sm:$0xff]   ;;  %v1650_v15 = vld [vmem:[%s2129_s8 + $0x58] sm:$0xff]   ;;  %v1651_v16 = vld [vmem:[%s2129_s8 + $0x20] sm:$0xff]   ;;  %p1847_p6 = pnand %p1846_p4, %p2064_p10  ;;  %s1851_s24 = scalar_lea.vmem %s1850_s7, 4096 }
  0x60   : > { %1497 = vmatpush3.bf16.msra.mxu0 %v1636_v1  ;;  %1551 = vmatpush3.bf16.msra.mxu1 %v1636_v1  ;;  %v1652_v17 = vld [vmem:[%s2129_s8 + $0x60] sm:$0xff]   ;;  %v1653_v18 = vld [vmem:[%s2129_s8 + $0x28] sm:$0xff]   ;;  %v1655_v20 = vld [vmem:[%s2129_s8 + $0x30] sm:$0xff]   ;;  %p1852_p12 = scmp.lt.s32.totalorder %s2411_s28, %s1850_s7  ;;  %p1853_p11 = scmp.lt.s32.totalorder %s1851_s24, %s1845_s11 }
  0x61   : > { %1498 = vmatprep.subr.bf16.mxu0 %v1637_v2  ;;  %1544 = vmatprep.subr.bf16.mxu1 %v1637_v2  ;;  %v1654_v19 = vld [vmem:[%s2129_s8 + $0x68] sm:$0xff]   ;;  %v1656_v21 = vld [vmem:[%s2129_s8 + $0x70] sm:$0xff]   ;;  %v1657_v22 = vld [vmem:[%s2129_s8 + $0x38] sm:$0xff]   ;;  %p1848_p8 = pneg %p1847_p6 }
  0x62   : > { %v1658_v23 = vld [vmem:[%s2129_s8 + $0x78] sm:$0xff]   ;;  %v2158_v24 = vld [vmem:[%s2465_s2] ss:$0 sm:$0xff]  ;;  %p1854_p0 = por %p1853_p11, %p1852_p12 }
  0x63   : > { %v2163_v26 = vld [vmem:[%s2466_s3] ss:$0 sm:$0xff] }
  0x64   : > { %1499 = vmatpush3.bf16.msra.mxu0 %v1637_v2  ;;  %1552 = vmatpush3.bf16.msra.mxu1 %v1637_v2  ;;  %p1855_p5 = pnand %p1854_p0, %p1848_p8 }
  0x65   : > { %1500 = vmatprep.subr.bf16.mxu0 %v1638_v3  ;;  %1545 = vmatprep.subr.bf16.mxu1 %v1638_v3 }
  0x68   : > { %1501 = vmatpush3.bf16.msra.mxu0 %v1638_v3  ;;  %1553 = vmatpush3.bf16.msra.mxu1 %v1638_v3 }
  0x69   : > { %1502 = vmatprep.subr.bf16.mxu0 %v1639_v6  ;;  %1546 = vmatprep.subr.bf16.mxu1 %v1639_v6 }
  0x6c   : > { %1503 = vmatpush3.bf16.msra.mxu0 %v1639_v6  ;;  %1554 = vmatpush3.bf16.msra.mxu1 %v1639_v6 }
  0x6d   : > { %1504 = vmatprep.subr.bf16.mxu0 %v1640_v7  ;;  %1547 = vmatprep.subr.bf16.mxu1 %v1640_v7 }
  0x70   : > { %1505 = vmatpush3.bf16.msra.mxu0 %v1640_v7  ;;  %1555 = vmatpush3.bf16.msra.mxu1 %v1640_v7 }
  0x71   : > { %1506 = vmatprep.subr.bf16.mxu0 %v1641_v8  ;;  %1548 = vmatprep.subr.bf16.mxu1 %v1641_v8 }
  0x74   : > { %1507 = vmatpush3.bf16.msra.mxu0 %v1641_v8  ;;  %1556 = vmatpush3.bf16.msra.mxu1 %v1641_v8 }
  0x75   : > { %1508 = vmatprep.subr.bf16.mxu0 %v1642_v9  ;;  %1549 = vmatprep.subr.bf16.mxu1 %v1642_v9 }
  0x78   : > { %1509 = vmatpush3.bf16.msra.mxu0 %v1642_v9  ;;  %1557 = vmatpush3.bf16.msra.mxu1 %v1642_v9 }
  0x7b   : > { %1511 = vmatmul.mubr.bf16.vlgmr.msra.gmra.mrb[0].mxu0 %v1645_v10  ;;  %1527 = vmatmul.mubr.bf16.vlgmr.msra.gmra.mrb[0].mxu1 %v1646_v11 }
  0x7c   : > { %1514 = vmatprep.mubr.bf16.mxu0 %v1647_v12  ;;  %1530 = vmatprep.mubr.bf16.mxu1 %v1648_v13 }
  0x83   : > { %1515 = vmatmul.mubr.bf16.gmra.mrb[4].mxu0 %v1649_v14  ;;  %1531 = vmatmul.mubr.bf16.gmra.mrb[4].mxu1 %v1650_v15 }
  0x84   : > { %1518 = vmatprep.mubr.bf16.mxu0 %v1651_v16  ;;  %1534 = vmatprep.mubr.bf16.mxu1 %v1652_v17 }
  0x8b   : > { %1519 = vmatmul.mubr.bf16.gmra.mrb[8].mxu0 %v1653_v18  ;;  %1535 = vmatmul.mubr.bf16.gmra.mrb[8].mxu1 %v1654_v19 }
  0x8c   : > { %1522 = vmatprep.mubr.bf16.mxu0 %v1655_v20  ;;  %1538 = vmatprep.mubr.bf16.mxu1 %v1656_v21 }
  0x93   : > { %1523 = vmatmul.mubr.bf16.gmra.mrb[12].mxu0 %v1657_v22  ;;  %1539 = vmatmul.mubr.bf16.gmra.mrb[12].mxu1 %v1658_v23 }
 0x14e   : > { %v1512_v25 = vpop.f32.mrb[0].mxu0  ;;  %v1528_v27 = vpop.f32.mrb[0].mxu1 }
 0x14f   : > { %v645_v28 = vmul.f32 %v1512_v25, %v2158_v24  ;;  %v661_v29 = vmul.f32 %v1528_v27, %v2158_v24  ;;  %v509_v30 = vpop.f32.mrb[1].mxu0  ;;  %v573_v31 = vpop.f32.mrb[1].mxu1 }
 0x150   : > { %v643_v32 = vmul.f32 %v2158_v24, %v509_v30  ;;  %v659_v33 = vmul.f32 %v2158_v24, %v573_v31  ;;  %v1513_v34 = vpop.f32.mrb[2].mxu0  ;;  %v1529_v35 = vpop.f32.mrb[2].mxu1 }
 0x151   : > { %v2170_v36 = vadd.f32 %v2163_v26, %v645_v28  ;;  %v2173_v37 = vadd.f32 %v2163_v26, %v661_v29  ;;  %v646_v38 = vmul.f32 %v1513_v34, %v2158_v24  ;;  %v662_v39 = vmul.f32 %v1529_v35, %v2158_v24  ;;  %v512_v40 = vpop.f32.mrb[3].mxu0  ;;  %v576_v41 = vpop.f32.mrb[3].mxu1 }
 0x152   : > { %v2178_v42 = vadd.f32 %v2163_v26, %v643_v32  ;;  %v2181_v43 = vadd.f32 %v2163_v26, %v659_v33  ;;  %v644_v44 = vmul.f32 %v2158_v24, %v512_v40  ;;  %v660_v45 = vmul.f32 %v2158_v24, %v576_v41 }
 0x153   : > { %v1274_v46 = vmul.f32 -1.442695, %v2170_v36  ;;  %v1290_v47 = vmul.f32 -1.442695, %v2173_v37  ;;  %v2188_v48 = vadd.f32 %v2163_v26, %v646_v38  ;;  %v2191_v49 = vadd.f32 %v2163_v26, %v662_v39 }
 0x154   : > { %v1272_v50 = vmul.f32 -1.442695, %v2178_v42  ;;  %v1288_v51 = vmul.f32 -1.442695, %v2181_v43  ;;  %v2196_v52 = vadd.f32 %v2163_v26, %v644_v44  ;;  %v2199_v53 = vadd.f32 %v2163_v26, %v660_v45 }
 0x155   : > { %1659 = vpow2.f32 %v1274_v46  ;;  %v1275_v54 = vmul.f32 -1.442695, %v2188_v48  ;;  %v1291_v55 = vmul.f32 -1.442695, %v2191_v49 }
 0x156   : > { %1661 = vpow2.f32 %v1290_v47  ;;  %v1516_v56 = vpop.f32.mrb[4].mxu0  ;;  %v1532_v57 = vpop.f32.mrb[4].mxu1  ;;  %v1273_v58 = vmul.f32 -1.442695, %v2196_v52  ;;  %v1289_v63 = vmul.f32 -1.442695, %v2199_v53 }
 0x157   : > { %1663 = vpow2.f32 %v1272_v50  ;;  %v649_v59 = vmul.f32 %v1516_v56, %v2158_v24  ;;  %v665_v60 = vmul.f32 %v1532_v57, %v2158_v24  ;;  %v525_v61 = vpop.f32.mrb[5].mxu0  ;;  %v589_v62 = vpop.f32.mrb[5].mxu1 }
 0x158   : > { %1665 = vpow2.f32 %v1288_v51  ;;  %v647_v0 = vmul.f32 %v2158_v24, %v525_v61  ;;  %v663_v1 = vmul.f32 %v2158_v24, %v589_v62  ;;  %v1517_v2 = vpop.f32.mrb[6].mxu0  ;;  %v1533_v3 = vpop.f32.mrb[6].mxu1 }
 0x159   : > { %1667 = vpow2.f32 %v1275_v54  ;;  %v2210_v4 = vadd.f32 %v2163_v26, %v649_v59  ;;  %v2213_v5 = vadd.f32 %v2163_v26, %v665_v60  ;;  %v650_v6 = vmul.f32 %v1517_v2, %v2158_v24  ;;  %v528_v7 = vpop.f32.mrb[7].mxu0  ;;  %v592_v8 = vpop.f32.mrb[7].mxu1 }
 0x15a   : > { %1669 = vpow2.f32 %v1291_v55  ;;  %v2217_v9 = vadd.f32 %v2163_v26, %v647_v0  ;;  %v2220_v10 = vadd.f32 %v2163_v26, %v663_v1  ;;  %v666_v11 = vmul.f32 %v1533_v3, %v2158_v24 }
 0x15b   : > { %1671 = vpow2.f32 %v1273_v58  ;;  %v1278_v12 = vmul.f32 -1.442695, %v2210_v4  ;;  %v1294_v13 = vmul.f32 -1.442695, %v2213_v5  ;;  %v2226_v14 = vadd.f32 %v2163_v26, %v650_v6 }
 0x15c   : > { %1673 = vpow2.f32 %v1289_v63  ;;  %v1276_v15 = vmul.f32 -1.442695, %v2217_v9  ;;  %v1292_v16 = vmul.f32 -1.442695, %v2220_v10  ;;  %v2232_v21 = vadd.f32 %v2163_v26, %v666_v11 }
 0x15d   : > { %1675 = vpow2.f32 %v1278_v12  ;;  %v1279_v17 = vmul.f32 -1.442695, %v2226_v14  ;;  %v648_v28 = vmul.f32 %v2158_v24, %v528_v7  ;;  %v664_v29 = vmul.f32 %v2158_v24, %v592_v8 }
 0x15e   : > { %1677 = vpow2.f32 %v1294_v13  ;;  %v1520_v18 = vpop.f32.mrb[8].mxu0  ;;  %v1536_v19 = vpop.f32.mrb[8].mxu1  ;;  %v2237_v44 = vmul.f32 -1.442695, %v2232_v21 }
 0x15f   : > { %v1660_v20 = vpop.eup %1659  ;;  %1679 = vpow2.f32 %v1276_v15  ;;  %v541_v22 = vpop.f32.mrb[9].mxu0  ;;  %v2240_v47 = vadd.f32 %v2163_v26, %v648_v28  ;;  %v2243_v50 = vadd.f32 %v2163_v26, %v664_v29  ;;  %v653_v55 = vmul.f32 %v1520_v18, %v2158_v24 }
 0x160   : > { %v605_v23 = vpop.f32.mrb[9].mxu1  ;;  %v1662_v25 = vpop.eup %1661  ;;  %v812_v27 = vadd.f32 1.0, %v1660_v20  ;;  %1681 = vpow2.f32 %v1292_v16  ;;  %v669_v56 = vmul.f32 %v1536_v19, %v2158_v24  ;;  %v651_v59 = vmul.f32 %v2158_v24, %v541_v22 }
 0x161   : > { %v1521_v30 = vpop.f32.mrb[10].mxu0  ;;  %v1537_v31 = vpop.f32.mrb[10].mxu1  ;;  %v828_v33 = vadd.f32 1.0, %v1662_v25  ;;  %1683 = vpow2.f32 %v1279_v17  ;;  %v667_v60 = vmul.f32 %v2158_v24, %v605_v23  ;;  %v1277_v11 = vmul.f32 -1.442695, %v2240_v47 }
 0x162   : > { %v1664_v32 = vpop.eup %1663  ;;  %v544_v34 = vpop.f32.mrb[11].mxu0  ;;  %1685 = vrcp.f32 %v812_v27  ;;  %v654_v1 = vmul.f32 %v1521_v30, %v2158_v24  ;;  %v670_v2 = vmul.f32 %v1537_v31, %v2158_v24  ;;  %v2262_v18 = vadd.f32 %v2163_v26, %v653_v55 }
 0x163   : > { %v1666_v35 = vpop.eup %1665  ;;  %v810_v38 = vadd.f32 1.0, %v1664_v32  ;;  %v608_v39 = vpop.f32.mrb[11].mxu1  ;;  %1687 = vrcp.f32 %v828_v33  ;;  %v652_v12 = vmul.f32 %v2158_v24, %v544_v34  ;;  %v2265_v19 = vadd.f32 %v2163_v26, %v669_v56 }
 0x164   : > { %v1668_v40 = vpop.eup %1667  ;;  %v826_v41 = vadd.f32 1.0, %v1666_v35  ;;  %v2272_v27 = vadd.f32 %v2163_v26, %v651_v59  ;;  %v2275_v28 = vadd.f32 %v2163_v26, %v667_v60  ;;  %v2278_v31 = vadd.f32 %v2163_v26, %v654_v1 }
 0x165   : > { %v1670_v45 = vpop.eup %1669  ;;  %1689 = vrcp.f32 %v810_v38  ;;  %v813_v46 = vadd.f32 1.0, %v1668_v40  ;;  %v2281_v32 = vadd.f32 %v2163_v26, %v670_v2  ;;  %v2284_v35 = vadd.f32 %v2163_v26, %v652_v12 }
 0x166   : > { %v1672_v51 = vpop.eup %1671  ;;  %1691 = vrcp.f32 %v826_v41  ;;  %v829_v54 = vadd.f32 1.0, %v1670_v45  ;;  %v1524_v61 = vpop.f32.mrb[12].mxu0  ;;  %v668_v38 = vmul.f32 %v2158_v24, %v608_v39  ;;  %v1293_v41 = vmul.f32 -1.442695, %v2243_v50 }
 0x167   : > { %v1674_v57 = vpop.eup %1673  ;;  %1693 = vrcp.f32 %v813_v46  ;;  %v811_v58 = vadd.f32 1.0, %v1672_v51  ;;  %v1540_v62 = vpop.f32.mrb[12].mxu1  ;;  %v1282_v45 = vmul.f32 -1.442695, %v2262_v18  ;;  %v1298_v51 = vmul.f32 -1.442695, %v2265_v19 }
 0x168   : > { %v1676_v63 = vpop.eup %1675  ;;  %1695 = vrcp.f32 %v829_v54  ;;  %v827_v0 = vadd.f32 1.0, %v1674_v57  ;;  %v2251_v3 = vpop.f32.mrb[13].mxu0  ;;  %v657_v54 = vmul.f32 %v1524_v61, %v2158_v24  ;;  %v673_v55 = vmul.f32 %v1540_v62, %v2158_v24 }
 0x169   : > { %v2253_v6 = vpop.f32.mrb[13].mxu1  ;;  %v1678_v7 = vpop.eup %1677  ;;  %1697 = vrcp.f32 %v811_v58  ;;  %v816_v8 = vadd.f32 1.0, %v1676_v63  ;;  %v1280_v57 = vmul.f32 -1.442695, %v2272_v27  ;;  %v1296_v39 = vmul.f32 -1.442695, %v2275_v28 }
 0x16a   : > { %v2257_v13 = vpop.f32.mrb[14].mxu0  ;;  %v2259_v15 = vpop.f32.mrb[14].mxu1  ;;  %1699 = vrcp.f32 %v827_v0  ;;  %v832_v17 = vadd.f32 1.0, %v1678_v7  ;;  %v1283_v58 = vmul.f32 -1.442695, %v2278_v31  ;;  %v2299_v0 = vadd.f32 %v2163_v26, %v668_v38 }
 0x16b   : > { %v1680_v16 = vpop.eup %1679  ;;  %v2267_v20 = vpop.f32.mrb[15].mxu0  ;;  %1701 = vrcp.f32 %v816_v8  ;;  %v1299_v60 = vmul.f32 -1.442695, %v2281_v32  ;;  %v1281_v63 = vmul.f32 -1.442695, %v2284_v35  ;;  %v2306_v8 = vadd.f32 %v2163_v26, %v657_v54 }
 0x16c   : > { %v2269_v22 = vpop.f32.mrb[15].mxu1  ;;  %v1682_v23 = vpop.eup %1681  ;;  %v814_v25 = vadd.f32 1.0, %v1680_v16  ;;  %1703 = vrcp.f32 %v832_v17 }
 0x16d   : > { %v1684_v29 = vpop.eup %1683  ;;  %v830_v30 = vadd.f32 1.0, %v1682_v23 }
 0x16e   : > { %v1686_v33 = vpop.eup %1685  ;;  %1705 = vrcp.f32 %v814_v25  ;;  %v817_v34 = vadd.f32 1.0, %v1684_v29 }
 0x16f   : > { %v1688_v40 = vpop.eup %1687  ;;  %1707 = vrcp.f32 %v830_v30  ;;  %v908_v62 = vmul.f32 %v1686_v33, %v2170_v36 }
 0x170   : > { %v1690_v46 = vpop.eup %1689  ;;  %1709 = vrcp.f32 %v817_v34 }
 0x171   : > { %v1692_v56 = vpop.eup %1691  ;;  %1711 = vpow2.f32 %v2237_v44  ;;  %v924_v44 = vmul.f32 %v1688_v40, %v2173_v37  ;;  %v906_v16 = vmul.f32 %v1690_v46, %v2178_v42 }
 0x172   : > { %v1694_v59 = vpop.eup %1693  ;;  %1713 = vpow2.f32 %v1277_v11  ;;  %v2309_v11 = vadd.f32 %v2163_v26, %v673_v55  ;;  %v922_v17 = vmul.f32 %v1692_v56, %v2181_v43 }
 0x173   : > { %v1696_v61 = vpop.eup %1695  ;;  %v909_v1 = vmul.f32 %v1694_v59, %v2188_v48  ;;  %1715 = vpow2.f32 %v1293_v41 }
 0x174   : > { %v1698_v2 = vpop.eup %1697  ;;  %v925_v7 = vmul.f32 %v1696_v61, %v2191_v49  ;;  %1717 = vpow2.f32 %v1282_v45  ;;  %v1302_v33 = vmul.f32 -1.442695, %v2309_v11 }
 0x175   : > { %v1700_v12 = vpop.eup %1699  ;;  %v1383_v36 = vpack.c.bf16 %v909_v1, %v908_v62  ;;  %v907_v37 = vmul.f32 %v1698_v2, %v2196_v52  ;;  %1719 = vpow2.f32 %v1298_v51  ;;  %v1297_v52 = vmul.f32 -1.442695, %v2299_v0 }
 0x176   : > { %v1702_v48 = vpop.eup %1701  ;;  %v1423_v23 = vpack.c.bf16 %v925_v7, %v924_v44  ;;  %v923_v49 = vmul.f32 %v1700_v12, %v2199_v53  ;;  %1721 = vpow2.f32 %v1280_v57  ;;  %v1286_v53 = vmul.f32 -1.442695, %v2306_v8 }
 0x177   : > { %v2315_v25 = vpop.eup %1703  ;;  %1455 = vst [vmem:[%s2319_s21 + $0x8] sm:$0xff] %v1383_v36   ;;  %v1378_v42 = vpack.c.bf16 %v907_v37, %v906_v16  ;;  %1723 = vpow2.f32 %v1296_v39  ;;  %v912_v40 = vmul.f32 %v1702_v48, %v2210_v4  ;;  %v655_v4 = vmul.f32 %v2158_v24, %v2251_v3 }
 0x178   : > { %v2323_v29 = vpop.eup %1705  ;;  %1463 = vst [vmem:[%s2319_s21 + $0x48] sm:$0xff] %v1423_v23   ;;  %v1418_v43 = vpack.c.bf16 %v923_v49, %v922_v17  ;;  %1725 = vpow2.f32 %v1283_v58  ;;  %v658_v62 = vmul.f32 %v2257_v13, %v2158_v24  ;;  %v674_v2 = vmul.f32 %v2259_v15, %v2158_v24 }
 0x179   : > { %v2327_v30 = vpop.eup %1707  ;;  %1379 = vst [vmem:[%s2319_s21] sm:$0xff] %v1378_v42   ;;  %1727 = vpow2.f32 %v1299_v60  ;;  %v671_v60 = vmul.f32 %v2158_v24, %v2253_v6  ;;  %v2344_v12 = vadd.f32 %v2163_v26, %v655_v4  ;;  %v656_v6 = vmul.f32 %v2158_v24, %v2267_v20 }
 0x17a   : > { %v1710_v34 = vpop.eup %1709  ;;  %1462 = vst [vmem:[%s2319_s21 + $0x40] sm:$0xff] %v1418_v43   ;;  %1729 = vpow2.f32 %v1281_v63  ;;  %v672_v37 = vmul.f32 %v2158_v24, %v2269_v22  ;;  %v2354_v17 = vadd.f32 %v2163_v26, %v658_v62  ;;  %v2357_v20 = vadd.f32 %v2163_v26, %v674_v2 }
 0x17b   : > { %v1712_v38 = vpop.eup %1711  ;;  %v913_v41 = vmul.f32 %v1710_v34, %v2226_v14  ;;  %1731 = vpow2.f32 %v1297_v52  ;;  %v2349_v13 = vadd.f32 %v2163_v26, %v671_v60  ;;  %v1284_v52 = vmul.f32 -1.442695, %v2344_v12 }
 0x17c   : > { %v1714_v45 = vpop.eup %1713  ;;  %v833_v46 = vadd.f32 1.0, %v1712_v38  ;;  %1733 = vpow2.f32 %v1286_v53  ;;  %v2361_v43 = vadd.f32 %v2163_v26, %v656_v6  ;;  %v2365_v53 = vadd.f32 %v2163_v26, %v672_v37 }
 0x17d   : > { %v1716_v51 = vpop.eup %1715  ;;  %v1393_v54 = vpack.c.bf16 %v913_v41, %v912_v40  ;;  %v815_v55 = vadd.f32 1.0, %v1714_v45  ;;  %1735 = vpow2.f32 %v1302_v33  ;;  %v1300_v22 = vmul.f32 -1.442695, %v2349_v13 }
 0x17e   : > { %v1718_v56 = vpop.eup %1717  ;;  %1737 = vrcp.f32 %v833_v46  ;;  %v831_v57 = vadd.f32 1.0, %v1716_v51  ;;  %v928_v34 = vmul.f32 %v2315_v25, %v2213_v5  ;;  %v1287_v40 = vmul.f32 -1.442695, %v2354_v17 }
 0x17f   : > { %v1720_v39 = vpop.eup %1719  ;;  %1457 = vst [vmem:[%s2319_s21 + $0x18] sm:$0xff] %v1393_v54   ;;  %1739 = vrcp.f32 %v815_v55  ;;  %v820_v58 = vadd.f32 1.0, %v1718_v56  ;;  %v910_v45 = vmul.f32 %v2323_v29, %v2217_v9  ;;  %v926_v46 = vmul.f32 %v2327_v30, %v2220_v10 }
 0x180   : > { %v1722_v59 = vpop.eup %1721  ;;  %1741 = vrcp.f32 %v831_v57  ;;  %v836_v14 = vadd.f32 1.0, %v1720_v39  ;;  %v1303_v26 = vmul.f32 -1.442695, %v2357_v20  ;;  %v1301_v9 = vmul.f32 -1.442695, %v2365_v53 }
 0x181   : > { %v1724_v63 = vpop.eup %1723  ;;  %1743 = vrcp.f32 %v820_v58  ;;  %v818_v61 = vadd.f32 1.0, %v1722_v59 }
 0x182   : > { %v1726_v44 = vpop.eup %1725  ;;  %1745 = vrcp.f32 %v836_v14  ;;  %v834_v1 = vadd.f32 1.0, %v1724_v63 }
 0x183   : > { %v1728_v7 = vpop.eup %1727  ;;  %1747 = vrcp.f32 %v818_v61  ;;  %v821_v3 = vadd.f32 1.0, %v1726_v44 }
 0x184   : > { %v1730_v16 = vpop.eup %1729  ;;  %1749 = vrcp.f32 %v834_v1  ;;  %v837_v36 = vadd.f32 1.0, %v1728_v7 }
 0x185   : > { %v1732_v48 = vpop.eup %1731  ;;  %1751 = vrcp.f32 %v821_v3  ;;  %v819_v15 = vadd.f32 1.0, %v1730_v16 }
 0x186   : > { %v1734_v23 = vpop.eup %1733  ;;  %1753 = vrcp.f32 %v837_v36  ;;  %v835_v49 = vadd.f32 1.0, %v1732_v48 }
 0x187   : > { %v1736_v42 = vpop.eup %1735  ;;  %1755 = vrcp.f32 %v819_v15  ;;  %v824_v62 = vadd.f32 1.0, %v1734_v23 }
 0x188   : > { %v1738_v24 = vpop.eup %1737  ;;  %1757 = vrcp.f32 %v835_v49  ;;  %v840_v1 = vadd.f32 1.0, %v1736_v42 }
 0x189   : > { %v1740_v33 = vpop.eup %1739  ;;  %v929_v38 = vmul.f32 %v1738_v24, %v2232_v21  ;;  %1759 = vpow2.f32 %v1284_v52  ;;  %v1285_v21 = vmul.f32 -1.442695, %v2361_v43 }
 0x18a   : > { %v1742_v41 = vpop.eup %1741  ;;  %v911_v51 = vmul.f32 %v1740_v33, %v2240_v47  ;;  %1761 = vpow2.f32 %v1300_v22 }
 0x18b   : > { %v1744_v54 = vpop.eup %1743  ;;  %v1433_v55 = vpack.c.bf16 %v929_v38, %v928_v34  ;;  %v927_v5 = vmul.f32 %v1742_v41, %v2243_v50  ;;  %1763 = vpow2.f32 %v1287_v40 }
 0x18c   : > { %v1746_v25 = vpop.eup %1745  ;;  %v1388_v56 = vpack.c.bf16 %v911_v51, %v910_v45  ;;  %1765 = vpow2.f32 %v1303_v26  ;;  %v916_v50 = vmul.f32 %v1744_v54, %v2262_v18 }
 0x18d   : > { %v1748_v29 = vpop.eup %1747  ;;  %1465 = vst [vmem:[%s2319_s21 + $0x58] sm:$0xff] %v1433_v55   ;;  %v1428_v10 = vpack.c.bf16 %v927_v5, %v926_v46  ;;  %1767 = vpow2.f32 %v1285_v21  ;;  %v932_v4 = vmul.f32 %v1746_v25, %v2265_v19 }
 0x18e   : > { %v1750_v47 = vpop.eup %1749  ;;  %1456 = vst [vmem:[%s2319_s21 + $0x10] sm:$0xff] %v1388_v56   ;;  %1769 = vpow2.f32 %v1301_v9  ;;  %v914_v60 = vmul.f32 %v1748_v29, %v2272_v27 }
 0x18f   : > { %v1752_v30 = vpop.eup %1751  ;;  %1464 = vst [vmem:[%s2319_s21 + $0x50] sm:$0xff] %v1428_v10   ;;  %v930_v18 = vmul.f32 %v1750_v47, %v2275_v28  ;;  %1771 = vrcp.f32 %v824_v62 }
 0x190   : > { %v1754_v57 = vpop.eup %1753  ;;  %v917_v39 = vmul.f32 %v1752_v30, %v2278_v31  ;;  %1773 = vrcp.f32 %v840_v1 }
 0x191   : > { %v1756_v58 = vpop.eup %1755  ;;  %v933_v59 = vmul.f32 %v1754_v57, %v2281_v32 }
 0x192   : > { %v1758_v14 = vpop.eup %1757  ;;  %v1403_v63 = vpack.c.bf16 %v917_v39, %v916_v50  ;;  %v915_v61 = vmul.f32 %v1756_v58, %v2284_v35 }
 0x193   : > { %v1443_v44 = vpack.c.bf16 %v933_v59, %v932_v4  ;;  %v931_v31 = vmul.f32 %v1758_v14, %v2299_v0  ;;  %v1760_v19 = vpop.eup %1759 }
 0x194   : > { %1459 = vst [vmem:[%s2319_s21 + $0x28] sm:$0xff] %v1403_v63   ;;  %v1398_v2 = vpack.c.bf16 %v915_v61, %v914_v60  ;;  %v1762_v7 = vpop.eup %1761  ;;  %v822_v27 = vadd.f32 1.0, %v1760_v19 }
 0x195   : > { %1467 = vst [vmem:[%s2319_s21 + $0x68] sm:$0xff] %v1443_v44   ;;  %v1438_v32 = vpack.c.bf16 %v931_v31, %v930_v18  ;;  %v1764_v3 = vpop.eup %1763  ;;  %v838_v35 = vadd.f32 1.0, %v1762_v7 }
 0x196   : > { %1458 = vst [vmem:[%s2319_s21 + $0x20] sm:$0xff] %v1398_v2   ;;  %v1766_v6 = vpop.eup %1765  ;;  %1775 = vrcp.f32 %v822_v27  ;;  %v825_v28 = vadd.f32 1.0, %v1764_v3 }
 0x197   : > { %1466 = vst [vmem:[%s2319_s21 + $0x60] sm:$0xff] %v1438_v32   ;;  %v1768_v16 = vpop.eup %1767  ;;  %1777 = vrcp.f32 %v838_v35  ;;  %v841_v0 = vadd.f32 1.0, %v1766_v6 }
 0x198   : > { %v1770_v36 = vpop.eup %1769  ;;  %1779 = vrcp.f32 %v825_v28  ;;  %v823_v37 = vadd.f32 1.0, %v1768_v16 }
 0x199   : > { %1781 = vrcp.f32 %v841_v0  ;;  %v839_v48 = vadd.f32 1.0, %v1770_v36  ;;  %v1772_v15 = vpop.eup %1771 }
 0x19a   : > { %1783 = vrcp.f32 %v823_v37  ;;  %v1774_v23 = vpop.eup %1773  ;;  %v920_v22 = vmul.f32 %v1772_v15, %v2306_v8 }
 0x19b   : > { %1785 = vrcp.f32 %v839_v48  ;;  %v936_v38 = vmul.f32 %v1774_v23, %v2309_v11 }
 0x1a0   : > { %v1776_v49 = vpop.eup %1775 }
 0x1a1   : > { %v1778_v42 = vpop.eup %1777  ;;  %v918_v45 = vmul.f32 %v1776_v49, %v2344_v12 }
 0x1a2   : > { %v1780_v52 = vpop.eup %1779 }
 0x1a3   : > { %v1782_v24 = vpop.eup %1781  ;;  %v921_v33 = vmul.f32 %v1780_v52, %v2354_v17  ;;  %v934_v17 = vmul.f32 %v1778_v42, %v2349_v13 }
 0x1a4   : > { %v1784_v34 = vpop.eup %1783  ;;  %v937_v40 = vmul.f32 %v1782_v24, %v2357_v20 }
 0x1a5   : > { %v1786_v41 = vpop.eup %1785  ;;  %v1413_v46 = vpack.c.bf16 %v921_v33, %v920_v22  ;;  %v919_v8 = vmul.f32 %v1784_v34, %v2361_v43 }
 0x1a6   : > { %v1453_v51 = vpack.c.bf16 %v937_v40, %v936_v38  ;;  %v935_v26 = vmul.f32 %v1786_v41, %v2365_v53 }
 0x1a7   : > { %1461 = vst [vmem:[%s2319_s21 + $0x38] sm:$0xff] %v1413_v46   ;;  %v1408_v11 = vpack.c.bf16 %v919_v8, %v918_v45 }
 0x1a8   : > { %1469 = vst [vmem:[%s2319_s21 + $0x78] sm:$0xff] %v1453_v51   ;;  %v1448_v12 = vpack.c.bf16 %v935_v26, %v934_v17 }
 0x1a9   : > { %1460 = vst [vmem:[%s2319_s21 + $0x30] sm:$0xff] %v1408_v11  }
 0x1aa   : > { %1468 = vst [vmem:[%s2319_s21 + $0x70] sm:$0xff] %v1448_v12  }
 0x1ab   : > { %1858 = shalt.err (!%p1855_p5)
}
 0x1ac   : > { %s1859_s8 = scalar_lea.hbm %s2409_s18, 2048  ;;  %s1863_s27 = scalar_lea.hbm %s2467_s4, 4096 }
 0x1ad   : > { %p1860_p9 = scmp.ne.s32.totalorder %s2409_s18, %s1859_s8  ;;  %p1864_p3 = scmp.lt.u32.totalorder %s2409_s18, %s2467_s4 }
 0x1ae   : > { %p1865_p7 = scmp.lt.u32.totalorder %s1863_s27, %s1859_s8  ;;  %p1867_p4 = scmp.lt.u32.totalorder %s1859_s8, %s2409_s18 }
 0x1af   : > { %p1861_p1 = pnand %p1860_p9, %p2064_p10 }
 0x1b0   : > { %p1866_p13 = por %p1865_p7, %p1864_p3 }
 0x1b1   : > { %p1862_p2 = pneg %p1861_p1 }
 0x1b2   : > { %p1868_p6 = por %p1867_p4, %p1866_p13 }
 0x1b4   : > { %p1869_p8 = pnand %p1868_p6, %p1862_p2 }
 0x1b6   : > { %1872 = shalt.err (!%p1869_p8)
}
 0x1b7   : > { %s1938_s22 = smov 64   ;;  %s1939_s6 = smov 4  }
 0x1b8   : > { %1564 = dma.vmem_to_hbm [thread:$0]  (%p2064_p10), %s2411_s28, 2048, %s2409_s18, %s1099_s9, %s1938_s22, %s1938_s22, %s1939_s6  }
 0x1b9 PF: > { %s1128_s29 = sand.u32 1, %s1911_s15   ;;  %p2485_p12 = scmp.ne.s32.totalorder %s2475_s26, 0 }
 0x1ba   : > { %p2486_p11 = scmp.ge.s32.totalorder %s1931_s20, 2  ;;  %s1129_s11 = scalar_lea.sflag [#allocation4], %s1128_s29 }
 0x1bc   : > { %p1575_p0 = pnand %p2486_p11, %p2485_p12 }
 0x1be   : > { %1906 = dma.done.wait (!%p1575_p0), %s1129_s11, 2048  }
 0x1bf   : > { %1908 = vsyncadd (!%p1575_p0), %s1129_s11, 4294965248  ;;  %s21_s20 = sadd.s32 1, %s1931_s20   ;;  %s2487_s15 = smov %s1915_s16 }
 0x1c0   : > { %p18_p5 = scmp.ge.s32.totalorder %s21_s20, 4   ;;  %s2488_s16 = smov %s1919_s17 }
 0x1c1   : > { %s2489_s17 = smov %s2073_s10  ;;  %s2490_s18 = smov %s1927_s19 }
 0x1c2   : > { %s2491_s19 = smov %s2493_s5  ;;  %20 = sbr.rel (!%p18_p5) target bundleno = 7 (0x7), region = 92 }
 0x1c9   :  { %1134 = vsyncpa [#allocation3], 1 }
 0x1ca   :  { %1136 = vsyncpa [#allocation3 + $0x1], 1 }
 0x1cb   :  { %1137 = vsyncpa [#allocation6], 1 }
 0x1cc   :  { %1138 = vsyncpa [#allocation4], 1 }
 0x1cd   :  { %1140 = vsyncpa [#allocation4 + $0x1], 1 }

</bundles_post_ra>
